<compile_context>
chip_gen: v6e
topology: v6e:2x2x1
jax: 0.10.0
libtpu: 0.0.40
codegen_flags: <defaults>
</compile_context>

<pallas_src>
import functools

import jax
import jax.numpy as jnp
from jax.experimental import pallas as pl
from jax.experimental.pallas import tpu as pltpu

_LANE = 128


def _round_up(x, m):
    return ((x + m - 1) // m) * m


def _ce_kernel(logits_ref, tgt_ref, w_ref, out_ref, *, ignore_index, s_total,
               tile_s, need_mask, has_weight):
    """One (batch n, spatial tile si) cell: writes [loss_sum, weight_sum] partials."""
    si = pl.program_id(1)

    logits = logits_ref[0].astype(jnp.float32)          # (C, TS)  classes on sublanes
    tgt = tgt_ref[0]                                     # (1, TS)  int32
    c, ts = logits.shape

    if need_mask:
        # Ragged last tile: mask lanes past the true spatial extent S and sanitize
        # any stale-VMEM garbage so no NaN/Inf can leak into the reductions.
        lane_pos = si * tile_s + jax.lax.broadcasted_iota(jnp.int32, (1, ts), 1)
        in_bounds = lane_pos < s_total                   # (1, TS) bool
        logits = jnp.where(in_bounds, logits, 0.0)       # finite everywhere
        valid = jnp.logical_and(in_bounds, tgt != ignore_index)
    else:
        valid = tgt != ignore_index

    # log-sum-exp over the class axis (sublane reduction -> XLU; exp/log -> EUP).
    m = jnp.max(logits, axis=0, keepdims=True)           # (1, TS)
    lse = m + jnp.log(jnp.sum(jnp.exp(logits - m), axis=0, keepdims=True))

    # Gather the target logit (and target-class weight) via a boolean one-hot.
    class_iota = jax.lax.broadcasted_iota(jnp.int32, (c, ts), 0)
    onehot = class_iota == tgt                           # (C, TS) bool
    picked_logit = jnp.sum(jnp.where(onehot, logits, 0.0), axis=0, keepdims=True)

    vf = valid.astype(jnp.float32)                       # (1, TS)
    if has_weight:
        w = w_ref[...].astype(jnp.float32)               # (C, 1)
        picked_w = jnp.sum(jnp.where(onehot, w, 0.0), axis=0, keepdims=True)
        wv = vf * picked_w                               # weight of each valid position
    else:
        wv = vf

    loss_sum = jnp.sum(wv * (lse - picked_logit))        # sum of -w[t]*log_softmax[t]
    w_sum = jnp.sum(wv)

    # Per-tile partials: row 0 = weighted NLL sum, row 1 = weight sum, each
    # replicated across 128 lanes for a single lane-dense (2, 128) store.
    row = jax.lax.broadcasted_iota(jnp.int32, (1, 1, 2, _LANE), 2)
    out_ref[...] = jnp.where(row == 0, loss_sum, w_sum)


def cross_entropy_class_weighted(logits_nchw, target_nhw, weight=None,
                                 ignore_index=-100,
                                 reduction="elementwise_mean"):
    """Matches torch.nn.functional.cross_entropy(input, target, weight,
    ignore_index=ignore_index, reduction=reduction) for 4-D NCHW inputs."""
    N, C, H, W = logits_nchw.shape
    S = H * W

    x = logits_nchw.reshape(N, C, S)                     # free reshape, keep input dtype
    t = target_nhw.reshape(N, 1, S).astype(jnp.int32)
    has_weight = weight is not None
    if has_weight:
        w = weight.astype(jnp.float32).reshape(C, 1)
    else:
        w = jnp.ones((C, 1), jnp.float32)                # passed but unused in-kernel

    # Spatial tile: as large as a double-buffered VMEM budget allows (this kernel
    # is HBM-bandwidth bound; big tiles amortize the ~0.35us per-step overhead).
    budget_bytes = 8 * 1024 * 1024                       # per input buffer (x2 double buffer)
    bytes_per_pos = C * x.dtype.itemsize + 4             # logits column + int32 target
    max_tile = max(_LANE, (budget_bytes // max(1, bytes_per_pos)) // _LANE * _LANE)
    tile_s = min(_round_up(S, _LANE), max_tile)
    num_s_tiles = pl.cdiv(S, tile_s)
    need_mask = (S % tile_s) != 0                        # only mask if the last tile is ragged

    kernel = functools.partial(_ce_kernel, ignore_index=int(ignore_index),
                               s_total=S, tile_s=tile_s,
                               need_mask=need_mask, has_weight=has_weight)

    partials = pl.pallas_call(
        kernel,
        out_shape=jax.ShapeDtypeStruct((N, num_s_tiles, 2, _LANE), jnp.float32),
        grid=(N, num_s_tiles),
        in_specs=[
            pl.BlockSpec((1, C, tile_s), lambda n, si: (n, 0, si)),   # logits (N, C, S)
            pl.BlockSpec((1, 1, tile_s), lambda n, si: (n, 0, si)),   # targets (N, 1, S)
            pl.BlockSpec((C, 1), lambda n, si: (0, 0)),               # class weights
        ],
        out_specs=pl.BlockSpec((1, 1, 2, _LANE), lambda n, si: (n, si, 0, 0)),
        compiler_params=pltpu.CompilerParams(
            dimension_semantics=("parallel", "parallel"),
            vmem_limit_bytes=48 * 1024 * 1024,
        ),
    )(x, t, w)

    sums = jnp.sum(partials[..., 0], axis=(0, 1))        # (2,) -> [loss_sum, w_sum]
    loss_sum, w_sum = sums[0], sums[1]
    if reduction in ("elementwise_mean", "mean"):
        return loss_sum / w_sum
    elif reduction == "sum":
        return loss_sum
    else:
        # TODO(synk): reduction='none' would need a per-element output layout.
        raise NotImplementedError(f"reduction={reduction!r} not supported here")


def _reference(logits_nchw, target_nhw, weight, ignore_index):
    """Pure-JAX reference matching F.cross_entropy (reduction='mean')."""
    N, C, H, W = logits_nchw.shape
    x = jnp.transpose(logits_nchw, (0, 2, 3, 1)).reshape(-1, C).astype(jnp.float32)
    t = target_nhw.reshape(-1).astype(jnp.int32)
    logp = jax.nn.log_softmax(x, axis=-1)
    valid = t != ignore_index
    t_safe = jnp.where(valid, t, 0)
    picked = jnp.take_along_axis(logp, t_safe[:, None], axis=-1)[:, 0]
    wt = jnp.ones((C,), jnp.float32) if weight is None else weight.astype(jnp.float32)
    wt = wt[t_safe]
    loss = jnp.where(valid, -wt * picked, 0.0)
    wsum = jnp.where(valid, wt, 0.0)
    return loss.sum() / wsum.sum()


if __name__ == "__main__":
    key = jax.random.PRNGKey(0)
    k1, k2, k3 = jax.random.split(key, 3)

    N, C, H, W = 2, 4, 16, 16
    ignore_index = -100

    logits = jax.random.normal(k1, (N, C, H, W), dtype=jnp.float32)
    target = jax.random.randint(k2, (N, H, W), 0, C, dtype=jnp.int32)
    # Sprinkle some ignored positions deterministically.
    ignore_mask = jax.random.bernoulli(k3, p=0.1, shape=(N, H, W))
    target = jnp.where(ignore_mask, jnp.int32(ignore_index), target)

    # Deterministic class weights (the module takes them as a forward arg).
    class_weight = jnp.array([0.5, 1.0, 1.5, 2.0], dtype=jnp.float32)

    # Weighted path.
    out_w = cross_entropy_class_weighted(logits, target, class_weight,
                                         ignore_index=ignore_index,
                                         reduction="elementwise_mean")
    out_w = jax.block_until_ready(out_w)
    ref_w = _reference(logits, target, class_weight, ignore_index)
    assert jnp.allclose(out_w, ref_w, rtol=1e-5, atol=1e-5), (out_w, ref_w)

    # Unweighted path (weight=None, specialized gather elided in-kernel).
    out_u = cross_entropy_class_weighted(logits, target, None,
                                         ignore_index=ignore_index,
                                         reduction="elementwise_mean")
    out_u = jax.block_until_ready(out_u)
    ref_u = _reference(logits, target, None, ignore_index)
    assert jnp.allclose(out_u, ref_u, rtol=1e-5, atol=1e-5), (out_u, ref_u)

    print("KERNEL_OK")
</pallas_src>

<mosaic_0001>
module attributes {stable_mosaic.version = 11 : i64} {
  func.func @_ce_kernel(%arg0: i32, %arg1: i32, %arg2: memref<1x4x256xf32, #tpu.memory_space<vmem>>, %arg3: memref<1x1x256xi32, #tpu.memory_space<vmem>>, %arg4: memref<4x1xf32, #tpu.memory_space<vmem>>, %arg5: memref<1x1x2x128xf32, #tpu.memory_space<vmem>>) attributes {dimension_semantics = [#tpu.dimension_semantics<parallel>, #tpu.dimension_semantics<parallel>], iteration_bounds = array<i64: 2, 1>, scalar_prefetch = 0 : i64, scratch_operands = 0 : i64, tpu.core_type = #tpu.core_type<tc>, window_params = [{transform_indices = @transform_0, window_bounds = array<i64: 1, 4, 256>}, {transform_indices = @transform_1, window_bounds = array<i64: 1, 1, 256>}, {pipeline_mode = #tpu.pipeline_mode<synchronous>, transform_indices = @transform_2, window_bounds = array<i64: 4, 1>}, {transform_indices = @transform_3, window_bounds = array<i64: 1, 1, 2, 128>}]} {
    %c0 = arith.constant 0 : index
    %c0_0 = arith.constant 0 : index
    %c0_1 = arith.constant 0 : index
    %0 = vector.load %arg2[%c0, %c0_0, %c0_1] : memref<1x4x256xf32, #tpu.memory_space<vmem>>, vector<1x4x256xf32>
    %1 = vector.shape_cast %0 : vector<1x4x256xf32> to vector<4x256xf32>
    %c0_2 = arith.constant 0 : index
    %c0_3 = arith.constant 0 : index
    %c0_4 = arith.constant 0 : index
    %2 = vector.load %arg3[%c0_2, %c0_3, %c0_4] : memref<1x1x256xi32, #tpu.memory_space<vmem>>, vector<1x1x256xi32>
    %3 = vector.shape_cast %2 : vector<1x1x256xi32> to vector<1x256xi32>
    %c-100_i32 = arith.constant -100 : i32
    %4 = vector.broadcast %c-100_i32 : i32 to vector<1x256xi32>
    %5 = arith.cmpi ne, %3, %4 : vector<1x256xi32>
    %cst = arith.constant dense<0xFF800000> : vector<256xf32>
    %6 = vector.multi_reduction <maximumf>, %1, %cst [0] : vector<4x256xf32> to vector<256xf32>
    %7 = vector.shape_cast %6 : vector<256xf32> to vector<1x256xf32>
    %8 = vector.broadcast %7 : vector<1x256xf32> to vector<4x256xf32>
    %9 = arith.subf %1, %8 : vector<4x256xf32>
    %10 = math.exp %9 : vector<4x256xf32>
    %cst_5 = arith.constant dense<0.000000e+00> : vector<256xf32>
    %11 = vector.multi_reduction <add>, %10, %cst_5 [0] : vector<4x256xf32> to vector<256xf32>
    %12 = vector.shape_cast %11 : vector<256xf32> to vector<1x256xf32>
    %13 = math.log %12 : vector<1x256xf32>
    %14 = arith.addf %7, %13 : vector<1x256xf32>
    %15 = tpu.iota {dimensions = array<i32: 0>} : vector<4x256xi32>
    %16 = vector.broadcast %3 : vector<1x256xi32> to vector<4x256xi32>
    %17 = arith.cmpi eq, %15, %16 : vector<4x256xi32>
    %cst_6 = arith.constant 0.000000e+00 : f32
    %18 = vector.broadcast %cst_6 : f32 to vector<4x256xf32>
    %19 = arith.select %17, %1, %18 : vector<4x256xi1>, vector<4x256xf32>
    %cst_7 = arith.constant dense<0.000000e+00> : vector<256xf32>
    %20 = vector.multi_reduction <add>, %19, %cst_7 [0] : vector<4x256xf32> to vector<256xf32>
    %21 = vector.shape_cast %20 : vector<256xf32> to vector<1x256xf32>
    %22 = arith.extui %5 : vector<1x256xi1> to vector<1x256xi32>
    %23 = arith.sitofp %22 : vector<1x256xi32> to vector<1x256xf32>
    %c0_8 = arith.constant 0 : index
    %c0_9 = arith.constant 0 : index
    %24 = vector.load %arg4[%c0_8, %c0_9] : memref<4x1xf32, #tpu.memory_space<vmem>>, vector<4x1xf32>
    %cst_10 = arith.constant 0.000000e+00 : f32
    %25 = vector.shape_cast %24 : vector<4x1xf32> to vector<4x1xf32>
    %26 = vector.broadcast %25 : vector<4x1xf32> to vector<4x256xf32>
    %27 = vector.broadcast %cst_10 : f32 to vector<4x256xf32>
    %28 = arith.select %17, %26, %27 : vector<4x256xi1>, vector<4x256xf32>
    %cst_11 = arith.constant dense<0.000000e+00> : vector<256xf32>
    %29 = vector.multi_reduction <add>, %28, %cst_11 [0] : vector<4x256xf32> to vector<256xf32>
    %30 = vector.shape_cast %29 : vector<256xf32> to vector<1x256xf32>
    %31 = arith.mulf %23, %30 : vector<1x256xf32>
    %32 = arith.subf %14, %21 : vector<1x256xf32>
    %33 = arith.mulf %31, %32 : vector<1x256xf32>
    %34 = vector.shape_cast %33 : vector<1x256xf32> to vector<1x1x256xf32>
    %cst_12 = arith.constant dense<0.000000e+00> : vector<1xf32>
    %35 = vector.multi_reduction <add>, %34, %cst_12 [1, 2] : vector<1x1x256xf32> to vector<1xf32>
    %36 = vector.shape_cast %35 : vector<1xf32> to vector<1x1x1xf32>
    %37 = vector.extract %36[0, 0, 0] : f32 from vector<1x1x1xf32>
    %38 = vector.shape_cast %31 : vector<1x256xf32> to vector<1x1x256xf32>
    %cst_13 = arith.constant dense<0.000000e+00> : vector<1xf32>
    %39 = vector.multi_reduction <add>, %38, %cst_13 [1, 2] : vector<1x1x256xf32> to vector<1xf32>
    %40 = vector.shape_cast %39 : vector<1xf32> to vector<1x1x1xf32>
    %41 = vector.extract %40[0, 0, 0] : f32 from vector<1x1x1xf32>
    %42 = tpu.iota {dimensions = array<i32: 2>} : vector<1x1x2x128xi32>
    %c0_i32 = arith.constant 0 : i32
    %43 = vector.broadcast %c0_i32 : i32 to vector<1x1x2x128xi32>
    %44 = arith.cmpi eq, %42, %43 : vector<1x1x2x128xi32>
    %45 = vector.broadcast %37 : f32 to vector<1x1x2x128xf32>
    %46 = vector.broadcast %41 : f32 to vector<1x1x2x128xf32>
    %47 = arith.select %44, %45, %46 : vector<1x1x2x128xi1>, vector<1x1x2x128xf32>
    %c0_14 = arith.constant 0 : index
    %c0_15 = arith.constant 0 : index
    %c0_16 = arith.constant 0 : index
    %c0_17 = arith.constant 0 : index
    %48 = vector.load %arg5[%c0_14, %c0_15, %c0_16, %c0_17] : memref<1x1x2x128xf32, #tpu.memory_space<vmem>>, vector<1x1x2x128xf32>
    tpu.vector_store %arg5[%c0_14, %c0_15, %c0_16, %c0_17], %47 {strides = array<i32>} : memref<1x1x2x128xf32, #tpu.memory_space<vmem>>, vector<1x1x2x128xf32>,
    return
  }
  func.func @transform_0(%arg0: i32, %arg1: i32) -> (i32, i32, i32) {
    %c0_i32 = arith.constant 0 : i32
    %c0_i32_0 = arith.constant 0 : i32
    return %arg0, %c0_i32, %arg1 : i32, i32, i32
  }
  func.func @transform_1(%arg0: i32, %arg1: i32) -> (i32, i32, i32) {
    %c0_i32 = arith.constant 0 : i32
    %c0_i32_0 = arith.constant 0 : i32
    return %arg0, %c0_i32, %arg1 : i32, i32, i32
  }
  func.func @transform_2(%arg0: i32, %arg1: i32) -> (i32, i32) {
    %c0_i32 = arith.constant 0 : i32
    %c0_i32_0 = arith.constant 0 : i32
    %c0_i32_1 = arith.constant 0 : i32
    return %c0_i32, %c0_i32_0 : i32, i32
  }
  func.func @transform_3(%arg0: i32, %arg1: i32) -> (i32, i32, i32, i32) {
    %c0_i32 = arith.constant 0 : i32
    %c0_i32_0 = arith.constant 0 : i32
    %c0_i32_1 = arith.constant 0 : i32
    return %arg0, %arg1, %c0_i32, %c0_i32_0 : i32, i32, i32, i32
  }
}

</mosaic_0001>

<bundles_post_ra>
// kernel: tpu_custom_call.1
= control target key start
LH: loop header
LB: loop body
LE: loop exit
PB: predicated region body
PF: predicated region fallthrough
CT: control target
= control target key end

     0   :  { %8 = vsyncpa [#allocation3], 0  ;;  %s971_s0 = inlined_call_operand.hbm [shape: f32[2,4,256], index: 0, kind: input, shape index: {}]   ;;  %s972_s1 = inlined_call_operand.vmem [shape: s32[2,1,256], index: 1, kind: input, shape index: {}]   ;;  %s973_s2 = inlined_call_operand.vmem [shape: f32[4,1], index: 2, kind: input, shape index: {}]   ;;  %s974_s3 = inlined_call_operand.hbm [shape: f32[2,1,2,128], index: 3, kind: output, shape index: {}]  }
   0x1   :  { %10 = vsyncpa [#allocation3 + $0x1], 0 }
   0x2   :  { %11 = vsyncpa [#allocation4], 0 }
   0x3   :  { %13 = vsyncpa [#allocation4 + $0x1], 0  ;;  %s775_s12 = smov 0   ;;  %s777_s13 = smov 0  }
   0x4   :  { %s779_s14 = smov 0   ;;  %s781_s15 = smov 0  }
   0x5   :  { %s783_s16 = smov 0   ;;  %s785_s17 = smov 0  }
   0x6 LB: > { %s546_s18 = sadd.s32 4294967295, %s748_s17   ;;  %s547_s19 = sadd.s32 4294967294, %s748_s17   ;;  %s748_s17 = sphi %s785_s17, %s19_s17   ;;  %s744_s16 = sphi %s783_s16, %s990_s16   ;;  %s740_s15 = sphi %s781_s15, %s989_s15   ;;  %s736_s14 = sphi %s779_s14, %s988_s14   ;;  %s732_s13 = sphi %s777_s13, %s987_s13   ;;  %s728_s12 = sphi %s775_s12, %s986_s12  }
   0x7   : > { %s31_s20 = sadd.s32 1, %s744_s16  ;;  %s40_s21 = sadd.s32 1, %s736_s14 }
   0x8   : > { %p33_p0 = scmp.ge.s32.totalorder %s31_s20, 2  ;;  %p47_p1 = scmp.ne.s32.totalorder %s736_s14, %s732_s13 }
   0x9   : > { %p48_p2 = scmp.eq.s32.totalorder %s748_s17, 0  ;;  %p53_p3 = scmp.ne.s32.totalorder %s732_s13, %s728_s12 }
   0xa   : > { %s992_s20 = smov (%p33_p0, %s31_s20), 0  ;;  %p54_p5 = scmp.eq.s32.totalorder %s546_s18, 0 }
   0xb   : > { %p816_p4 = por %p48_p2, %p47_p1  ;;  %s35_s23 = ssub.s32 %s744_s16, %s992_s20 }
   0xc   : > { %p128_p6 = scmp.eq.s32.totalorder %s546_s18, 1  ;;  %p38_p7 = scmp.eq.s32.totalorder %s35_s23, 0 }
   0xd   : > { %p822_p8 = por %p54_p5, %p53_p3  ;;  %p134_p10 = scmp.eq.s32.totalorder %s547_s19, 1 }
   0xe   : > { %p826_p9 = por %p128_p6, %p47_p1  ;;  %p579_p13 = scmp.lt.s32.totalorder %s748_s17, 2 }
   0xf   : > { %s831_s26 = scalar_select %p38_p7, %s736_s14, %s40_s21  }
  0x10   : > { %p833_p11 = por %p134_p10, %p53_p3  ;;  %s157_s28 = sand.u32 1, %s736_s14  }
  0x11   : > { %s550_s29 = sshll.u32 %s157_s28, 3  ;;  %s562_s30 = sshll.u32 %s744_s16, 7 }
  0x12   : > { %s978_s27 = scalar_select %p833_p11, 1, 0 }
  0x13   : > { %s169_s6 = scalar_lea.hbm %s971_s0, %s562_s30  ;;  %s161_s7 = scalar_lea.vmem [#allocation2], %s550_s29 }
  0x14   : > { %s171_s8 = sshll.u32 %s161_s7, 4  ;;  %p846_p0 = pnand %p579_p13, %p816_p4  ;;  %s172_s8 = int_to_ptr.vmem [resolvable:$true] %s171_s8 }
  0x15   : > { %p553_p1 = scmp.ge.s32.totalorder %s748_s17, 1  ;;  %p188_p2 = scmp.lt.s32.totalorder %s748_s17, 3 }
  0x16   : > { %s158_s10 = scalar_lea.sflag [#allocation3], %s157_s28  ;;  %p642_p3 = pneg %p846_p0 }
  0x17   : > { %s653_s11 = scalar_lea.vmem %s172_s8, 128  ;;  %s750_s18 = smov [#allocation2]  }
  0x18   : > { %p654_p5 = scmp.ne.s32.totalorder %s172_s8, %s653_s11  ;;  %s658_s19 = sshll.u32 %s750_s18, 4  ;;  %s659_s19 = int_to_ptr.vmem [resolvable:$false] %s658_s19 }
  0x19   : > { %s660_s21 = scalar_lea.vmem %s659_s19, 256  ;;  %p661_p10 = scmp.lt.s32.totalorder %s172_s8, %s659_s19 }
  0x1a   : > { %p656_p6 = pnand %p654_p5, %p642_p3  ;;  %p662_p12 = scmp.lt.s32.totalorder %s660_s21, %s653_s11 }
  0x1c   : > { %p657_p7 = pneg %p656_p6  ;;  %p663_p4 = por %p662_p12, %p661_p10 }
  0x1e   : > { %p664_p13 = pnand %p663_p4, %p657_p7 }
  0x20   : > { %667 = shalt.err (!%p664_p13)
}
  0x21   : > { %574 = dma.hbm_to_vmem [thread:$0]  (!%p846_p0), %s169_s6, 128, %s172_s8, %s158_s10  }
  0x22   : > { %p189_p11 = pnand %p553_p1, %p188_p2 }
  0x23   : > { %s861_s22 = sand.u32 (!%p189_p11), 1, %s732_s13  }
  0x24   : > { %192 = sbr.rel (%p189_p11) target bundleno = 413 (0x19d), region = 32  ;;  %s554_s23 = sshll.u32 (!%p189_p11), %s861_s22, 3 }
  0x25   : > { %s195_s28 = scalar_lea.sflag (!%p189_p11), [#allocation3], %s861_s22  ;;  %s198_s29 = scalar_lea.vmem (!%p189_p11), [#allocation2], %s554_s23 }
  0x29   : > { %719 = dma.done.wait (%p822_p8), %s195_s28, 128  }
  0x2a   : > { %721 = vsyncadd (%p822_p8), %s195_s28, 4294967168  ;;  %v751_v0 = vmov 0   ;;  %v320_v1 = vld [vmem:[%s973_s2] sm:$0xf]  ;;  %vm245_vm0 = vcmask 1043456   ;;  %p231_p8 = scmp.lt.s32.totalorder %s740_s15, 1  ;;  %v290_v25 = vlaneseq }
  0x2b   : > { %632 = vset.pattern.permute.xlu0 %v751_v0  ;;  %v239_v2 = vld [vmem:[%s198_s29] sm:$0xff]  ;;  %vm393_vm4 = vcmask 1040384   ;;  %s555_s9 = sshll.u32 %s861_s22, 1  ;;  %s559_s10 = sshll.u32 %s740_s15, 5 }
  0x2c   : > { %323 = vperm.xlu0 %632, %v320_v1   ;;  %v243_v3 = vcombine.high %v239_v2, %v239_v2  ;;  %v246_v4 = vsel %vm245_vm0, %v239_v2, -inf  ;;  %s232_s24 = scalar_select %p231_p8, %s740_s15, 1  ;;  %v878_v28 = vshrl.u32 %v290_v25, 7 }
  0x2d   : > { %v247_v6 = vrot.slane %v246_v4, 4  ;;  %s228_s11 = scalar_lea.vmem [#allocation5], %s555_s9  ;;  %s929_s29 = scalar_lea.hbm %s974_s3, %s559_s10 }
  0x2e   : > { %v253_v5 = vsel %vm245_vm0, %v243_v3, -inf  ;;  %s556_s5 = sshll.u32 %s232_s24, 1  ;;  %v884_v31 = vsub.s32 0, %v878_v28  ;;  %v887_v32 = vsub.s32 1, %v878_v28  ;;  %s449_s18 = sshll.u32 %s228_s11, 4  ;;  %vm429_vm5 = vcmp.eq.s32.totalorder %v878_v28, 0  ;;  %s450_s18 = int_to_ptr.vmem [resolvable:$true] %s449_s18 }
  0x2f   : > { %v254_v7 = vrot.slane %v253_v5, 4  ;;  %v248_v8 = vmax.f32 %v246_v4, %v247_v6  ;;  %s237_s8 = scalar_lea.vmem %s972_s1, %s556_s5  ;;  %s435_s30 = scalar_lea.sflag [#allocation4], %s861_s22 }
  0x30   : > { %v889_v33 = vld [vmem:[%s237_s8] sm:$0x3]  ;;  %s668_s4 = scalar_lea.vmem %s450_s18, 32  ;;  %s754_s15 = smov [#allocation5]  }
  0x31   : > { %v255_v9 = vmax.f32 %v253_v5, %v254_v7  ;;  %v249_v10 = vrot.slane %v248_v8, 2  ;;  %v295_v36 = vrot.slane %v889_v33, %v884_v31  ;;  %v299_v37 = vrot.slane %v889_v33, %v887_v32  ;;  %p669_p11 = scmp.ne.s32.totalorder %s450_s18, %s668_s4  ;;  %s672_s24 = sshll.u32 %s754_s15, 4  ;;  %s673_s24 = int_to_ptr.vmem [resolvable:$false] %s672_s24 }
  0x32   : > { %vm241_vm3 = vcmp.ne.s32.totalorder %v889_v33, 4294967196  ;;  %s674_s5 = scalar_lea.vmem %s673_s24, 64  ;;  %p675_p1 = scmp.lt.s32.totalorder %s450_s18, %s673_s24 }
  0x33   : > { %v256_v11 = vrot.slane %v255_v9, 2  ;;  %v250_v12 = vmax.f32 %v248_v8, %v249_v10  ;;  %vm896_vm1 = vcmp.eq.s32.totalorder %v878_v28, %v295_v36  ;;  %vm901_vm2 = vcmp.eq.s32.totalorder %v878_v28, %v299_v37  ;;  %p670_p12 = pnand %p669_p11, %p826_p9  ;;  %p676_p2 = scmp.lt.s32.totalorder %s674_s5, %s668_s4 }
  0x34   : > { %v302_v44 = vsel %vm896_vm1, %v239_v2, 0.0  ;;  %v303_v45 = vsel %vm901_vm2, %v243_v3, 0.0 }
  0x35   : > { %v257_v13 = vmax.f32 %v255_v9, %v256_v11  ;;  %v251_v14 = vrot.slane %v250_v12, 1  ;;  %v304_v48 = vsel %vm245_vm0, %v302_v44, 0.0  ;;  %v311_v49 = vsel %vm245_vm0, %v303_v45, 0.0  ;;  %p671_p0 = pneg %p670_p12  ;;  %p677_p3 = por %p676_p2, %p675_p1 }
  0x36   : > { %v305_v50 = vrot.slane %v304_v48, 4  ;;  %v312_v51 = vrot.slane %v311_v49, 4 }
  0x37   : > { %v258_v15 = vrot.slane %v257_v13, 1  ;;  %v252_v16 = vmax.f32 %v250_v12, %v251_v14  ;;  %p678_p5 = pnand %p677_p3, %p671_p0 }
  0x38   : > { %v306_v52 = vadd.f32 %v305_v50, %v304_v48  ;;  %v313_v53 = vadd.f32 %v312_v51, %v311_v49 }
  0x39   : > { %v259_v17 = vmax.f32 %v257_v13, %v258_v15  ;;  %v752_v13 = vmov 1966171168  }
  0x3a   : > { %v307_v54 = vrot.slane %v306_v52, 2  ;;  %v314_v55 = vrot.slane %v313_v53, 2  ;;  %v346_v14 = vunpack.c.l.s4 %v752_v13 }
  0x3b   : > { %v262_v18 = vcombine.low %v252_v16, %v259_v17 }
  0x3c   : > { %v308_v56 = vadd.f32 %v307_v54, %v306_v52  ;;  %v315_v57 = vadd.f32 %v314_v55, %v313_v53 }
  0x3d   : > { %v264_v19 = vsub.f32 %v239_v2, %v262_v18 }
  0x3e   : > { %v309_v60 = vrot.slane %v308_v56, 1  ;;  %v316_v61 = vrot.slane %v315_v57, 1 }
  0x3f   : > { %v265_v20 = vmul.f32 1.442695, %v264_v19 }
  0x40   : > { %v310_v3 = vadd.f32 %v309_v60, %v308_v56  ;;  %v317_v4 = vadd.f32 %v316_v61, %v315_v57 }
  0x41   : > { %634 = vpow2.f32 %v265_v20 }
  0x4e   : > { %v635_v21 = vpop.eup %634 }
  0x4f   : > { %v268_v22 = vcombine.high %v635_v21, %v635_v21  ;;  %v270_v23 = vsel %vm245_vm0, %v635_v21, 0.0 }
  0x50   : > { %v271_v26 = vrot.slane %v270_v23, 4 }
  0x51   : > { %v277_v24 = vsel %vm245_vm0, %v268_v22, 0.0 }
  0x52   : > { %v278_v27 = vrot.slane %v277_v24, 4  ;;  %v272_v29 = vadd.f32 %v271_v26, %v270_v23  ;;  %v347_v23 = vunpack.c.0.s8 %v346_v14 }
  0x54   : > { %v279_v30 = vadd.f32 %v278_v27, %v277_v24  ;;  %v273_v34 = vrot.slane %v272_v29, 2 }
  0x56   : > { %v280_v35 = vrot.slane %v279_v30, 2  ;;  %v274_v38 = vadd.f32 %v273_v34, %v272_v29 }
  0x58   : > { %v281_v39 = vadd.f32 %v280_v35, %v279_v30  ;;  %v275_v42 = vrot.slane %v274_v38, 1  ;;  %v753_v35 = vmov 0.0  }
  0x59   : > { %v557_v36 = vsel %vm241_vm3, 1.0, %v753_v35 }
  0x5a   : > { %v282_v43 = vrot.slane %v281_v39, 1  ;;  %v276_v46 = vadd.f32 %v275_v42, %v274_v38 }
  0x5c   : > { %v283_v47 = vadd.f32 %v282_v43, %v281_v39  ;;  %636 = vlog2.f32 %v276_v46 }
  0x5e   : > { %638 = vlog2.f32 %v283_v47 }
  0x69   : > { %v637_v58 = vpop.eup %636 }
  0x6a   : > { %v285_v62 = vmul.f32 0.6931472, %v637_v58 }
  0x6b   : > { %v639_v59 = vpop.eup %638 }
  0x6c   : > { %v287_v63 = vmul.f32 0.6931472, %v639_v59  ;;  %v288_v7 = vadd.f32 %v285_v62, %v252_v16  ;;  %v350_v16 = vsub.s32 %v347_v23, %v878_v28 }
  0x6e   : > { %v289_v8 = vadd.f32 %v287_v63, %v259_v17  ;;  %v361_v19 = vsub.f32 %v288_v7, %v310_v3 }
  0x70   : > { %v362_v20 = vsub.f32 %v289_v8, %v317_v4 }
  0x72   : > { %v365_v26 = vcombine.low %v361_v19, %v362_v20 }
  0x74   : > { %v372_v30 = vrot.slane %v365_v26, %v350_v16 }
  0x76   : > { %v379_v38 = vrot.slane %v372_v30, %v350_v16 }
  0xa7   : > { %v324_v0 = vpop.permute.xlu0 %323 }
  0xa8   : > { %v326_v1 = vsel %vm896_vm1, %v324_v0, 0.0  ;;  %v327_v2 = vsel %vm901_vm2, %v324_v0, 0.0 }
  0xa9   : > { %v328_v5 = vsel %vm245_vm0, %v326_v1, 0.0  ;;  %v335_v6 = vsel %vm245_vm0, %v327_v2, 0.0 }
  0xaa   : > { %v329_v9 = vrot.slane %v328_v5, 4  ;;  %v336_v10 = vrot.slane %v335_v6, 4 }
  0xac   : > { %v330_v11 = vadd.f32 %v329_v9, %v328_v5  ;;  %v337_v12 = vadd.f32 %v336_v10, %v335_v6 }
  0xae   : > { %v331_v15 = vrot.slane %v330_v11, 2  ;;  %v338_v18 = vrot.slane %v337_v12, 2 }
  0xb0   : > { %v332_v21 = vadd.f32 %v331_v15, %v330_v11  ;;  %v339_v22 = vadd.f32 %v338_v18, %v337_v12 }
  0xb2   : > { %v333_v24 = vrot.slane %v332_v21, 1  ;;  %v340_v25 = vrot.slane %v339_v22, 1 }
  0xb4   : > { %v334_v27 = vadd.f32 %v333_v24, %v332_v21  ;;  %v341_v29 = vadd.f32 %v340_v25, %v339_v22 }
  0xb6   : > { %v344_v17 = vcombine.low %v334_v27, %v341_v29 }
  0xb8   : > { %v351_v34 = vrot.slane %v344_v17, %v350_v16 }
  0xba   : > { %v358_v37 = vrot.slane %v351_v34, %v350_v16 }
  0xbc   : > { %v360_v39 = vmul.f32 %v557_v36, %v358_v37 }
  0xbe   : > { %v410_v40 = vrot.slane %v360_v39, %v884_v31  ;;  %v414_v41 = vrot.slane %v360_v39, %v887_v32  ;;  %v381_v42 = vmul.f32 %v379_v38, %v360_v39 }
  0xc0   : > { %v417_v43 = vsel %vm393_vm4, %v410_v40, 0.0  ;;  %v418_v44 = vsel %vm393_vm4, %v414_v41, 0.0  ;;  %v386_v45 = vrot.slane %v381_v42, %v884_v31  ;;  %v390_v33 = vrot.slane %v381_v42, %v887_v32 }
  0xc1   : > { %v419_v46 = vadd.f32 %v418_v44, %v417_v43 }
  0xc2   : > { %v394_v47 = vsel %vm393_vm4, %v386_v45, 0.0  ;;  %v395_v48 = vsel %vm393_vm4, %v390_v33, 0.0 }
  0xc3   : > { %420 = vadd.xlane.f32.xlu1 %v419_v46  ;;  %v396_v49 = vadd.f32 %v395_v48, %v394_v47 }
  0xc5   : > { %397 = vadd.xlane.f32.xlu0 %v396_v49 }
 0x14c   : > { %v421_v50 = vpop.xlane.xlu1 %420 }
 0x14d   : > { %v422_v51 = vrot.slane %v421_v50, 4 }
 0x14e   : > { %v398_v52 = vpop.xlane.xlu0 %397 }
 0x14f   : > { %v423_v53 = vadd.f32 %v422_v51, %v421_v50  ;;  %v399_v54 = vrot.slane %v398_v52, 4 }
 0x151   : > { %v424_v55 = vrot.slane %v423_v53, 2  ;;  %v400_v56 = vadd.f32 %v399_v54, %v398_v52 }
 0x153   : > { %v425_v57 = vadd.f32 %v424_v55, %v423_v53  ;;  %v401_v58 = vrot.slane %v400_v56, 2 }
 0x155   : > { %v402_v31 = vadd.f32 %v401_v58, %v400_v56  ;;  %v426_v59 = vrot.slane %v425_v57, 1 }
 0x157   : > { %v403_v32 = vrot.slane %v402_v31, 1  ;;  %v427_v61 = vadd.f32 %v426_v59, %v425_v57 }
 0x159   : > { %v404_v60 = vadd.f32 %v403_v32, %v402_v31 }
 0x15b   : > { %563 = vpush %v404_v60 }
 0x15c   : > { %565 = vpush %v427_v61 }
 0x18c   : > { %s564_s19 = spop %563 }
 0x18d   : > { %v430_v62 = vstv %s564_s19  ;;  %s566_s21 = spop %565 }
 0x18e   : > { %v431_v63 = vstv %s566_s21 }
 0x18f   : > { %v432_v0 = vsel %vm429_vm5, %v430_v62, %v431_v63 }
 0x190   : > { %433 = vst [vmem:[%s228_s11] sm:$0x3] %v432_v0 }
 0x191   : > { %681 = shalt.err (!%p678_p5)
}
 0x192   : > { %s682_s6 = scalar_lea.hbm %s929_s29, 32  ;;  %s686_s8 = scalar_lea.hbm %s974_s3, 64 }
 0x193   : > { %p683_p6 = scmp.ne.s32.totalorder %s929_s29, %s682_s6  ;;  %p687_p4 = scmp.lt.s32.totalorder %s929_s29, %s974_s3 }
 0x194   : > { %p688_p13 = scmp.lt.s32.totalorder %s686_s8, %s682_s6 }
 0x195   : > { %p684_p7 = pnand %p683_p6, %p826_p9 }
 0x196   : > { %p689_p8 = por %p688_p13, %p687_p4 }
 0x197   : > { %p685_p10 = pneg %p684_p7 }
 0x199   : > { %p690_p11 = pnand %p689_p8, %p685_p10 }
 0x19b   : > { %693 = shalt.err (!%p690_p11)
}
 0x19c   : > { %569 = dma.vmem_to_hbm [thread:$0]  (%p826_p9), %s450_s18, 32, %s929_s29, %s435_s30  }
 0x19d PF: > { %s461_s11 = sand.u32 1, %s728_s12   ;;  %p984_p12 = scmp.ne.s32.totalorder %s978_s27, 0 }
 0x19e   : > { %p985_p0 = scmp.ge.s32.totalorder %s748_s17, 2  ;;  %s462_s19 = scalar_lea.sflag [#allocation4], %s461_s11 }
 0x1a0   : > { %p576_p1 = pnand %p985_p0, %p984_p12 }
 0x1a2   : > { %p577_p2 = pneg %p576_p1 }
 0x1a4   : > { %723 = dma.done.wait (%p577_p2), %s462_s19, 32  }
 0x1a5   : > { %725 = vsyncadd (%p577_p2), %s462_s19, 4294967264  ;;  %s19_s17 = sadd.s32 1, %s748_s17   ;;  %s986_s12 = smov %s732_s13 }
 0x1a6   : > { %p16_p3 = scmp.ge.s32.totalorder %s19_s17, 4   ;;  %s987_s13 = smov %s736_s14 }
 0x1a7   : > { %s988_s14 = smov %s831_s26  ;;  %s989_s15 = smov %s744_s16 }
 0x1a8   : > { %s990_s16 = smov %s992_s20  ;;  %18 = sbr.rel (!%p16_p3) target bundleno = 6 (0x6), region = 80 }
 0x1ad   :  { %467 = vsyncpa [#allocation3], 1 }
 0x1ae   :  { %469 = vsyncpa [#allocation3 + $0x1], 1 }
 0x1af   :  { %470 = vsyncpa [#allocation4], 1 }
 0x1b0   :  { %472 = vsyncpa [#allocation4 + $0x1], 1 }

</bundles_post_ra>
